<compile_context>
chip_gen: v5e
topology: v5e:2x2
jax: 0.10.0
libtpu: 0.0.40
codegen_flags: <defaults>
</compile_context>

<pallas_src>
import jax
import jax.numpy as jnp
from jax.experimental import pallas as pl
from jax.experimental.pallas import tpu as pltpu

LANES = 128
SUBLANES = 8
TARGET_BLOCK_ROWS = 4096   # 4096 x 128 f32 = 2 MiB per input block
MAX_CORES = 2              # v7x has 2 TCs; extra outer iteration is harmless on 1-TC chips


def _make_loss_kernel(rows, block_rows, steps, need_mask):
    """rows/block_rows/steps/need_mask are static Python values."""

    def kernel(x_ref, y_ref, out_ref, acc_ref):
        c = pl.program_id(0)   # core-split axis ("parallel")
        i = pl.program_id(1)   # reduction axis ("arbitrary")

        # Zero the resident vector accumulator at the start of each core's sweep.
        @pl.when(i == 0)
        def _():
            acc_ref[...] = jnp.zeros_like(acc_ref)

        d = x_ref[...].astype(jnp.float32) - y_ref[...].astype(jnp.float32)

        if need_mask:
            # Mask rows past the real extent (partial last block / overshoot
            # blocks from the core split re-read clamped data -> force to 0).
            block_start = (c * steps + i) * block_rows
            row_ids = jax.lax.broadcasted_iota(jnp.int32, d.shape, 0) + block_start
            d = jnp.where(row_ids < rows, d, 0.0)

        # Pure element-wise VPU work in the hot loop: fused (d^2 + |d|).
        acc_ref[...] += d * d + jnp.abs(d)

        # Single cross-lane/sublane reduce per core, broadcast-filled into the
        # lane-dense per-core output tile.
        @pl.when(i == steps - 1)
        def _():
            out_ref[...] = jnp.full(out_ref.shape, jnp.sum(acc_ref[...]), jnp.float32)

    return kernel


def custom_loss(x, y):
    """0.5 * mean((x-y)^2) + 0.5 * mean(|x-y|), computed in a Pallas kernel."""
    assert x.shape == y.shape
    n = x.size

    # Row-major flatten/reshape is free (no HBM copy); keep the native dtype
    # and upcast inside the kernel.
    xf = jnp.ravel(x)
    yf = jnp.ravel(y)

    # Only pad up to the next multiple of 128 lanes (rare; zero diff on pad
    # lanes -> no contribution to either sum).
    rem = n % LANES
    if rem:
        xf = jnp.pad(xf, (0, LANES - rem))
        yf = jnp.pad(yf, (0, LANES - rem))

    rows = xf.size // LANES
    x2d = xf.reshape(rows, LANES)
    y2d = yf.reshape(rows, LANES)

    # Block sizing: multiple of 8 sublanes, capped at ~2 MiB per input block.
    rows8 = ((rows + SUBLANES - 1) // SUBLANES) * SUBLANES
    block_rows = min(TARGET_BLOCK_ROWS, rows8)
    n_blocks = pl.cdiv(rows, block_rows)
    ncores = MAX_CORES if n_blocks >= MAX_CORES else 1
    steps = pl.cdiv(n_blocks, ncores)
    need_mask = (ncores * steps * block_rows) > rows
    last_block = n_blocks - 1

    def in_map(c, i):
        # Clamp so every DMA stays in bounds; overshoot steps re-read the last
        # block and are fully masked to zero inside the kernel.
        return (jnp.minimum(c * steps + i, last_block), 0)

    kernel = _make_loss_kernel(rows, block_rows, steps, need_mask)

    out = pl.pallas_call(
        kernel,
        out_shape=jax.ShapeDtypeStruct((ncores * SUBLANES, LANES), jnp.float32),
        grid_spec=pltpu.PrefetchScalarGridSpec(
            num_scalar_prefetch=0,
            grid=(ncores, steps),
            in_specs=[
                pl.BlockSpec((block_rows, LANES), in_map),
                pl.BlockSpec((block_rows, LANES), in_map),
            ],
            out_specs=pl.BlockSpec((SUBLANES, LANES), lambda c, i: (c, 0)),
            scratch_shapes=[
                pltpu.VMEM((block_rows, LANES), jnp.float32),
            ],
        ),
        compiler_params=pltpu.CompilerParams(
            dimension_semantics=("parallel", "arbitrary"),
            vmem_limit_bytes=32 << 20,
        ),
    )(x2d, y2d)

    # Each core's (8,128) tile is filled with its partial sum of (d^2 + |d|);
    # pick one element per core and combine.
    total = jnp.sum(out[::SUBLANES, 0])
    return 0.5 * total / float(n)


if __name__ == "__main__":
    key = jax.random.PRNGKey(0)
    kx, ky = jax.random.split(key)
    x = jax.random.normal(kx, (2, 4, 16, 16), dtype=jnp.float32)
    y = jax.random.normal(ky, (2, 4, 16, 16), dtype=jnp.float32)

    loss = custom_loss(x, y)
    loss = jax.block_until_ready(loss)

    # Reference check (plain JAX).
    ref = 0.5 * jnp.mean((x - y) ** 2) + 0.5 * jnp.mean(jnp.abs(x - y))
    assert jnp.allclose(loss, ref, rtol=1e-5, atol=1e-6), (loss, ref)

    print("KERNEL_OK")
</pallas_src>

<mosaic_0001>
module attributes {stable_mosaic.version = 11 : i64} {
  func.func @kernel(%arg0: i32, %arg1: i32, %arg2: memref<16x128xf32, #tpu.memory_space<vmem>>, %arg3: memref<16x128xf32, #tpu.memory_space<vmem>>, %arg4: memref<8x128xf32, #tpu.memory_space<vmem>>, %arg5: memref<16x128xf32, #tpu.memory_space<vmem>>) attributes {dimension_semantics = [#tpu.dimension_semantics<parallel>, #tpu.dimension_semantics<arbitrary>], iteration_bounds = array<i64: 1, 1>, scalar_prefetch = 0 : i64, scratch_operands = 1 : i64, tpu.core_type = #tpu.core_type<tc>, window_params = [{transform_indices = @transform_0, window_bounds = array<i64: 16, 128>}, {transform_indices = @transform_1, window_bounds = array<i64: 16, 128>}, {transform_indices = @transform_2, window_bounds = array<i64: 8, 128>}]} {
    %c0_i32 = arith.constant 0 : i32
    %0 = arith.cmpi eq, %arg1, %c0_i32 : i32
    %1 = arith.extui %0 : i1 to i32
    %c0_i32_0 = arith.constant 0 : i32
    %2 = arith.cmpi ne, %1, %c0_i32_0 : i32
    scf.if %2 {
      %cst = arith.constant 0.000000e+00 : f32
      %15 = vector.broadcast %cst : f32 to vector<16x128xf32>
      %c0_10 = arith.constant 0 : index
      %c0_11 = arith.constant 0 : index
      %16 = vector.load %arg5[%c0_10, %c0_11] : memref<16x128xf32, #tpu.memory_space<vmem>>, vector<16x128xf32>
      tpu.vector_store %arg5[%c0_10, %c0_11], %15 {strides = array<i32>} : memref<16x128xf32, #tpu.memory_space<vmem>>, vector<16x128xf32>,
    } else {
    }
    %c0 = arith.constant 0 : index
    %c0_1 = arith.constant 0 : index
    %3 = vector.load %arg2[%c0, %c0_1] : memref<16x128xf32, #tpu.memory_space<vmem>>, vector<16x128xf32>
    %c0_2 = arith.constant 0 : index
    %c0_3 = arith.constant 0 : index
    %4 = vector.load %arg3[%c0_2, %c0_3] : memref<16x128xf32, #tpu.memory_space<vmem>>, vector<16x128xf32>
    %5 = arith.subf %3, %4 : vector<16x128xf32>
    %c0_4 = arith.constant 0 : index
    %c0_5 = arith.constant 0 : index
    %6 = vector.load %arg5[%c0_4, %c0_5] : memref<16x128xf32, #tpu.memory_space<vmem>>, vector<16x128xf32>
    %7 = arith.mulf %5, %5 : vector<16x128xf32>
    %8 = math.absf %5 : vector<16x128xf32>
    %9 = arith.addf %7, %8 : vector<16x128xf32>
    %10 = arith.addf %6, %9 : vector<16x128xf32>
    %c0_6 = arith.constant 0 : index
    %c0_7 = arith.constant 0 : index
    %11 = vector.load %arg5[%c0_6, %c0_7] : memref<16x128xf32, #tpu.memory_space<vmem>>, vector<16x128xf32>
    tpu.vector_store %arg5[%c0_6, %c0_7], %10 {strides = array<i32>} : memref<16x128xf32, #tpu.memory_space<vmem>>, vector<16x128xf32>,
    %c0_i32_8 = arith.constant 0 : i32
    %12 = arith.cmpi eq, %arg1, %c0_i32_8 : i32
    %13 = arith.extui %12 : i1 to i32
    %c0_i32_9 = arith.constant 0 : i32
    %14 = arith.cmpi ne, %13, %c0_i32_9 : i32
    scf.if %14 {
      %c0_10 = arith.constant 0 : index
      %c0_11 = arith.constant 0 : index
      %15 = vector.load %arg5[%c0_10, %c0_11] : memref<16x128xf32, #tpu.memory_space<vmem>>, vector<16x128xf32>
      %16 = vector.shape_cast %15 : vector<16x128xf32> to vector<1x16x128xf32>
      %cst = arith.constant dense<0.000000e+00> : vector<1xf32>
      %17 = vector.multi_reduction <add>, %16, %cst [1, 2] : vector<1x16x128xf32> to vector<1xf32>
      %18 = vector.shape_cast %17 : vector<1xf32> to vector<1x1x1xf32>
      %19 = vector.extract %18[0, 0, 0] : f32 from vector<1x1x1xf32>
      %20 = vector.broadcast %19 : f32 to vector<8x128xf32>
      %c0_12 = arith.constant 0 : index
      %c0_13 = arith.constant 0 : index
      %21 = vector.load %arg4[%c0_12, %c0_13] : memref<8x128xf32, #tpu.memory_space<vmem>>, vector<8x128xf32>
      tpu.vector_store %arg4[%c0_12, %c0_13], %20 {strides = array<i32>} : memref<8x128xf32, #tpu.memory_space<vmem>>, vector<8x128xf32>,
    } else {
    }
    return
  }
  func.func @transform_0(%arg0: i32, %arg1: i32) -> (i32, i32) {
    %c1_i32 = arith.constant 1 : i32
    %0 = arith.muli %arg0, %c1_i32 : i32
    %1 = arith.addi %0, %arg1 : i32
    %c0_i32 = arith.constant 0 : i32
    %2 = arith.minsi %1, %c0_i32 : i32
    %c0_i32_0 = arith.constant 0 : i32
    %c0_i32_1 = arith.constant 0 : i32
    return %2, %c0_i32_0 : i32, i32
  }
  func.func @transform_1(%arg0: i32, %arg1: i32) -> (i32, i32) {
    %c1_i32 = arith.constant 1 : i32
    %0 = arith.muli %arg0, %c1_i32 : i32
    %1 = arith.addi %0, %arg1 : i32
    %c0_i32 = arith.constant 0 : i32
    %2 = arith.minsi %1, %c0_i32 : i32
    %c0_i32_0 = arith.constant 0 : i32
    %c0_i32_1 = arith.constant 0 : i32
    return %2, %c0_i32_0 : i32, i32
  }
  func.func @transform_2(%arg0: i32, %arg1: i32) -> (i32, i32) {
    %c0_i32 = arith.constant 0 : i32
    %c0_i32_0 = arith.constant 0 : i32
    return %arg0, %c0_i32 : i32, i32
  }
}

</mosaic_0001>

<bundles_post_ra>
// kernel: tpu_custom_call.1
= control target key start
LH: loop header
LB: loop body
LE: loop exit
PB: predicated region body
PF: predicated region fallthrough
CT: control target
= control target key end

     0   :  { %7 = vsyncpa [#allocation4], 0  ;;  %s241_s0 = inlined_call_operand.hbm [shape: f32[16,128], index: 0, kind: input, shape index: {}]   ;;  %s242_s1 = inlined_call_operand.hbm [shape: f32[16,128], index: 1, kind: input, shape index: {}]   ;;  %s243_s2 = inlined_call_operand.hbm [shape: f32[8,128], index: 2, kind: output, shape index: {}]  }
   0x1   :  { %8 = vsyncpa [#allocation7], 0 }
   0x2   :  { %9 = vsyncpa [#allocation5], 0  ;;  %s20_s11 = sshll.u32 %s241_s0, 4  ;;  %s212_s12 = smov [#allocation3]   ;;  %s21_s11 = int_to_ptr.hbm [resolvable:$true] %s20_s11 }
   0x3   :  { %s22_s13 = sshll.u32 %s212_s12, 4  ;;  %s39_s16 = sshll.u32 %s242_s1, 4  ;;  %s23_s13 = int_to_ptr.vmem [resolvable:$true] %s22_s13  ;;  %s40_s16 = int_to_ptr.hbm [resolvable:$true] %s39_s16 }
   0x4   :  { %s213_s17 = smov 128   ;;  %s214_s18 = smov 8  }
   0x5   :  { %28 = dma.hbm_to_vmem [thread:$0]  %s21_s11, 256, %s23_s13, [#allocation4], %s213_s17, %s213_s17, %s214_s18  }
   0x6   :  { %s215_s19 = smov [#allocation6]  }
   0x7   :  { %s41_s20 = sshll.u32 %s215_s19, 4  ;;  %s42_s20 = int_to_ptr.vmem [resolvable:$true] %s41_s20 }
   0x8   :  { %47 = dma.hbm_to_vmem [thread:$0]  %s40_s16, 256, %s42_s20, [#allocation7], %s213_s17, %s213_s17, %s214_s18  }
   0x9   :  { %206 = dma.done.wait [#allocation4], 256  }
   0xa   :  { %207 = vsyncadd [#allocation4], 4294967040 }
   0xb   :  { %208 = dma.done.wait [#allocation7], 256  }
   0xc   :  { %209 = vsyncadd [#allocation7], 4294967040  ;;  %v70_v0 = vld [vmem:[#allocation3] sm:$0xff]  ;;  %v71_v1 = vld [vmem:[#allocation3 + $0x8] sm:$0xff]  ;;  %s216_s0 = smov [#allocation8]   ;;  %s112_s23 = sshll.u32 %s243_s2, 4  ;;  %s113_s23 = int_to_ptr.hbm [resolvable:$true] %s112_s23 }
   0xd   :  { %v72_v2 = vld [vmem:[#allocation6] sm:$0xff]  ;;  %v73_v3 = vld [vmem:[#allocation6 + $0x8] sm:$0xff]  ;;  %s110_s1 = sshll.u32 %s216_s0, 4  ;;  %s111_s1 = int_to_ptr.vmem [resolvable:$true] %s110_s1 }
   0xe   :  { %v74_v4 = vsub.f32 %v70_v0, %v72_v2  ;;  %v75_v5 = vsub.f32 %v71_v1, %v73_v3 }
  0x10   :  { %v78_v6 = vmul.f32 %v74_v4, %v74_v4  ;;  %v80_v7 = vand.u32 2147483647, %v74_v4  ;;  %v79_v8 = vmul.f32 %v75_v5, %v75_v5  ;;  %v81_v9 = vand.u32 2147483647, %v75_v5 }
  0x12   :  { %v82_v10 = vadd.f32 %v80_v7, %v78_v6  ;;  %v83_v11 = vadd.f32 %v81_v9, %v79_v8 }
  0x14   :  { %v93_v12 = vadd.f32 %v83_v11, %v82_v10 }
  0x16   :  { %94 = vadd.xlane.f32.xlu0 %v93_v12 }
  0x89   :  { %v95_v13 = vpop.xlane.xlu0 %94 }
  0x8a   :  { %v96_v14 = vrot.slane %v95_v13, 4 }
  0x8c   :  { %v97_v15 = vadd.f32 %v96_v14, %v95_v13 }
  0x8e   :  { %v98_v16 = vrot.slane %v97_v15, 2 }
  0x90   :  { %v99_v17 = vadd.f32 %v98_v16, %v97_v15 }
  0x92   :  { %v100_v18 = vrot.slane %v99_v17, 1 }
  0x94   :  { %v101_v19 = vadd.f32 %v100_v18, %v99_v17 }
  0x96   :  { %127 = vpush %v101_v19 }
  0xc7   :  { %s128_s24 = spop %127 }
  0xc8   :  { %v103_v20 = vstv %s128_s24 }
  0xc9   :  { %104 = vst [vmem:[#allocation8] sm:$0xff] %v103_v20 }
  0xca   :  { %115 = dma.vmem_to_hbm [thread:$0]  %s111_s1, 128, %s113_s23, [#allocation5]  }
  0xcb   :  { %210 = dma.done.wait [#allocation5], 128  }
  0xcc   :  { %211 = vsyncadd [#allocation5], 4294967168 }
  0xcd   :  { %120 = vsyncpa [#allocation4], 1 }
  0xce   :  { %121 = vsyncpa [#allocation7], 1 }
  0xcf   :  { %122 = vsyncpa [#allocation5], 1 }

</bundles_post_ra>
